<compile_context>
chip_gen: v6e
topology: v6e:2x2x1
jax: 0.10.0
libtpu: 0.0.40
codegen_flags: <defaults>
</compile_context>

<pallas_src>
import functools

import jax
import jax.numpy as jnp
from jax.experimental import pallas as pl
from jax.experimental.pallas import tpu as pltpu

LANE = 128
NEG_BIG = -1e30  # effectively -inf for log-softmax masking, stays finite in f32


def _vmem_spec():
    # Whole array resident in VMEM, no tiling (shapes here are tiny).
    return pl.BlockSpec(memory_space=pltpu.MemorySpace.VMEM)


def _round_up(n, m):
    return ((n + m - 1) // m) * m


def _pad_cols(a, target, fill=0.0):
    pad = target - a.shape[-1]
    if pad <= 0:
        return a
    return jnp.pad(a, ((0, 0), (0, pad)), constant_values=fill)


# --------------------------------------------------------------------------
# One-time parameter preparation (OUT of the per-call path)
# --------------------------------------------------------------------------
def prepare_mlp_params(mlp_params):
    w1, b1, w2, b2, w3, b3 = mlp_params
    c = w3.shape[1]
    cp = _round_up(c, LANE)
    w3p = _pad_cols(w3, cp, 0.0)
    # Padded logit lanes get bias -1e30 so log-softmax only "sees" real classes.
    # NOTE: only safe while the output dtype stays f32.
    b3p = _pad_cols(b3, cp, NEG_BIG)
    return (w1, b1, w2, b2, w3p, b3p), c


def prepare_lstm_params(lstm_params):
    wih, whh, bih, bhh, wf1, bf1, wf2, bf2 = lstm_params
    c = wf2.shape[1]
    cp = _round_up(c, LANE)
    b_comb = bih + bhh                      # combined bias, [1, 4H]
    wf2p = _pad_cols(wf2, cp, 0.0)          # lane-dense 128-wide output layer
    bf2p = _pad_cols(bf2, cp, 0.0)
    return (wih, whh, b_comb, wf1, bf1, wf2p, bf2p), c


# --------------------------------------------------------------------------
# Fused kernel: MLP branch + LSTM branch in a single pallas_call
# --------------------------------------------------------------------------
def make_fused_kernel(B, T, H):
    def kernel(x_mlp_ref, w1_ref, b1_ref, w2_ref, b2_ref, w3_ref, b3_ref,
               xs_ref, wih_ref, whh_ref, bg_ref,
               wf1_ref, bf1_ref, wf2_ref, bf2_ref,
               mlp_out_ref, lstm_out_ref):
        # -------------------- MLP branch --------------------
        x = x_mlp_ref[...]
        h1 = jnp.maximum(
            jnp.dot(x, w1_ref[...], preferred_element_type=jnp.float32) + b1_ref[...], 0.0)
        h2 = jnp.maximum(
            jnp.dot(h1, w2_ref[...], preferred_element_type=jnp.float32) + b2_ref[...], 0.0)
        logits = jnp.dot(h2, w3_ref[...], preferred_element_type=jnp.float32) + b3_ref[...]
        m = jnp.max(logits, axis=-1, keepdims=True)
        s = logits - m
        lse = jnp.log(jnp.sum(jnp.exp(s), axis=-1, keepdims=True))
        mlp_out_ref[...] = s - lse

        # -------------------- LSTM branch --------------------
        xs_bm = xs_ref[...]                          # [B*T, I], batch-major rows

        # Batch-major -> time-major row reorder: static sublane slices + concat,
        # all in vregs, off the serial recurrence.
        xs_tm = jnp.concatenate(
            [xs_bm[b * T + t:b * T + t + 1, :] for t in range(T) for b in range(B)],
            axis=0)                                  # [T*B, I]

        # Hoisted fused input projection for all gates + combined bias: one matmul.
        gx = jnp.dot(xs_tm, wih_ref[...],
                     preferred_element_type=jnp.float32) + bg_ref[...]   # [T*B, 4H]

        whh = whh_ref[...]                           # [H, 4H] fused recurrent weights
        h = jnp.zeros((B, H), jnp.float32)           # h0 = 0 (as in the PyTorch forward)
        c = jnp.zeros((B, H), jnp.float32)           # c0 = 0
        hs = []
        for t in range(T):                           # static unroll; T is tiny
            # ONE MXU round trip on the serial chain per step.
            gates = gx[t * B:(t + 1) * B, :] + jnp.dot(
                h, whh, preferred_element_type=jnp.float32)              # [B, 4H]
            # Static lane extractions (i, f, g, o in PyTorch order) — XLU/VPU filler.
            i_g = jax.nn.sigmoid(gates[:, 0:H])
            f_g = jax.nn.sigmoid(gates[:, H:2 * H])
            g_g = jnp.tanh(gates[:, 2 * H:3 * H])
            o_g = jax.nn.sigmoid(gates[:, 3 * H:4 * H])
            c = f_g * c + i_g * g_g
            h = o_g * jnp.tanh(c)
            hs.append(h)                             # stays in vregs — no scratch

        # time-major -> batch-major (PyTorch .view(-1, C) row order), in-kernel.
        hseq_bm = jnp.concatenate(
            [hs[t][b:b + 1, :] for b in range(B) for t in range(T)], axis=0)  # [B*T, H]

        f1 = jnp.maximum(
            jnp.dot(hseq_bm, wf1_ref[...], preferred_element_type=jnp.float32)
            + bf1_ref[...], 0.0)
        # wf2/bf2 padded to 128 lanes -> unmasked lane-dense store.
        lstm_out_ref[...] = jnp.dot(
            f1, wf2_ref[...], preferred_element_type=jnp.float32) + bf2_ref[...]

    return kernel


# --------------------------------------------------------------------------
# Jitted forward: one pallas_call, wrapper only reshapes x and slices lanes
# --------------------------------------------------------------------------
@functools.partial(jax.jit, static_argnames=("c_mlp", "c_lstm"))
def nn_forward(x_mlp, x_lstm, mlp_prepared, lstm_prepared, *, c_mlp, c_lstm):
    w1, b1, w2, b2, w3p, b3p = mlp_prepared
    wih, whh, bg, wf1, bf1, wf2p, bf2p = lstm_prepared

    B_m = x_mlp.shape[0]
    B, T, I = x_lstm.shape
    H = whh.shape[0]
    cp_mlp = w3p.shape[1]
    cp_lstm = wf2p.shape[1]

    # Contiguous (free) reshape: batch-major rows [b*T + t, I].
    xs_bm = x_lstm.reshape(B * T, I)

    kernel = make_fused_kernel(B, T, H)
    mlp_out_p, lstm_out_p = pl.pallas_call(
        kernel,
        out_shape=(jax.ShapeDtypeStruct((B_m, cp_mlp), jnp.float32),
                   jax.ShapeDtypeStruct((B * T, cp_lstm), jnp.float32)),
        in_specs=[_vmem_spec()] * 15,
        out_specs=(_vmem_spec(), _vmem_spec()),
    )(x_mlp, w1, b1, w2, b2, w3p, b3p,
      xs_bm, wih, whh, bg, wf1, bf1, wf2p, bf2p)

    # Only lane slices remain in the wrapper (padded lanes hold garbage/-1e30).
    return mlp_out_p[:, :c_mlp], lstm_out_p[:, :c_lstm]


# --------------------------------------------------------------------------
# Pure-JAX references (for correctness check)
# --------------------------------------------------------------------------
def mlp_ref(x, params):
    w1, b1, w2, b2, w3, b3 = params
    h1 = jnp.maximum(x @ w1 + b1, 0.0)
    h2 = jnp.maximum(h1 @ w2 + b2, 0.0)
    logits = h2 @ w3 + b3
    return jax.nn.log_softmax(logits, axis=-1)


def lstm_ref(x, params):
    wih, whh, bih, bhh, wf1, bf1, wf2, bf2 = params
    B, T, _ = x.shape
    H = whh.shape[0]
    h = jnp.zeros((B, H), jnp.float32)
    c = jnp.zeros((B, H), jnp.float32)
    hs = []
    for t in range(T):
        gates = x[:, t, :] @ wih + h @ whh + bih + bhh
        i = jax.nn.sigmoid(gates[:, 0:H])
        f = jax.nn.sigmoid(gates[:, H:2 * H])
        g = jnp.tanh(gates[:, 2 * H:3 * H])
        o = jax.nn.sigmoid(gates[:, 3 * H:4 * H])
        c = f * c + i * g
        h = o * jnp.tanh(c)
        hs.append(h)
    hseq = jnp.stack(hs, axis=1).reshape(B * T, H)
    f1 = jnp.maximum(hseq @ wf1 + bf1, 0.0)
    return f1 @ wf2 + bf2


# --------------------------------------------------------------------------
# Deterministic parameter init (PyTorch-style uniform(+-1/sqrt(fan_in)))
# --------------------------------------------------------------------------
def init_linear(key, fan_in, fan_out):
    kw, kb = jax.random.split(key)
    bound = 1.0 / float(fan_in) ** 0.5
    w = jax.random.uniform(kw, (fan_in, fan_out), jnp.float32, -bound, bound)
    b = jax.random.uniform(kb, (1, fan_out), jnp.float32, -bound, bound)
    return w, b


if __name__ == "__main__":
    key = jax.random.PRNGKey(0)
    ks = jax.random.split(key, 16)

    # ---- MLP config: input_dims=16, out_classes=10, batch=8 ----
    input_dims, out_classes, B_mlp = 16, 10, 8
    w1, b1 = init_linear(ks[0], input_dims, 8)
    w2, b2 = init_linear(ks[1], 8, 8)
    w3, b3 = init_linear(ks[2], 8, out_classes)
    mlp_params = (w1, b1, w2, b2, w3, b3)
    x_mlp = jax.random.normal(ks[3], (B_mlp, input_dims), jnp.float32)

    # ---- LSTM config: input_size=3, hidden=8, out_classes=100, batch=2, seq=4 ----
    I, H, C_lstm, B_lstm, T = 3, 8, 100, 2, 4
    bound = 1.0 / float(H) ** 0.5
    wih = jax.random.uniform(ks[4], (I, 4 * H), jnp.float32, -bound, bound)
    whh = jax.random.uniform(ks[5], (H, 4 * H), jnp.float32, -bound, bound)
    bih = jax.random.uniform(ks[6], (1, 4 * H), jnp.float32, -bound, bound)
    bhh = jax.random.uniform(ks[7], (1, 4 * H), jnp.float32, -bound, bound)
    wf1, bf1 = init_linear(ks[8], H, 8)
    wf2, bf2 = init_linear(ks[9], 8, C_lstm)
    lstm_params = (wih, whh, bih, bhh, wf1, bf1, wf2, bf2)
    x_lstm = jax.random.normal(ks[10], (B_lstm, T, I), jnp.float32)

    # ---- One-time parameter prep (out of the per-call path) ----
    mlp_prepared, c_mlp = prepare_mlp_params(mlp_params)
    lstm_prepared, c_lstm = prepare_lstm_params(lstm_params)
    mlp_prepared = jax.tree_util.tree_map(jax.block_until_ready, mlp_prepared)
    lstm_prepared = jax.tree_util.tree_map(jax.block_until_ready, lstm_prepared)

    # ---- Run fused Pallas kernel (single pallas_call for both branches) ----
    y_mlp, y_lstm = nn_forward(x_mlp, x_lstm, mlp_prepared, lstm_prepared,
                               c_mlp=c_mlp, c_lstm=c_lstm)
    y_mlp = jax.block_until_ready(y_mlp)
    y_lstm = jax.block_until_ready(y_lstm)

    # ---- Check against pure-JAX references ----
    y_mlp_ref = mlp_ref(x_mlp, mlp_params)
    y_lstm_ref = lstm_ref(x_lstm, lstm_params)
    assert y_mlp.shape == (B_mlp, out_classes)
    assert y_lstm.shape == (B_lstm * T, C_lstm)
    assert jnp.allclose(y_mlp, y_mlp_ref, atol=2e-3, rtol=2e-3)
    assert jnp.allclose(y_lstm, y_lstm_ref, atol=2e-3, rtol=2e-3)

    # TODO(synk): optional v7x-only variant — grid=(2,) "parallel" to run the two
    # independent branches on the two TensorCores; kept single-program here since
    # that is the optimal form on v5e/v6e (1 TC) and cannot be validated locally.
    print("KERNEL_OK")
</pallas_src>

<mosaic_0001>
module attributes {stable_mosaic.version = 11 : i64} {
  func.func @kernel(%arg0: memref<8x16xf32, #tpu.memory_space<vmem>>, %arg1: memref<16x8xf32, #tpu.memory_space<vmem>>, %arg2: memref<1x8xf32, #tpu.memory_space<vmem>>, %arg3: memref<8x8xf32, #tpu.memory_space<vmem>>, %arg4: memref<1x8xf32, #tpu.memory_space<vmem>>, %arg5: memref<8x128xf32, #tpu.memory_space<vmem>>, %arg6: memref<1x128xf32, #tpu.memory_space<vmem>>, %arg7: memref<8x3xf32, #tpu.memory_space<vmem>>, %arg8: memref<3x32xf32, #tpu.memory_space<vmem>>, %arg9: memref<8x32xf32, #tpu.memory_space<vmem>>, %arg10: memref<1x32xf32, #tpu.memory_space<vmem>>, %arg11: memref<8x8xf32, #tpu.memory_space<vmem>>, %arg12: memref<1x8xf32, #tpu.memory_space<vmem>>, %arg13: memref<8x128xf32, #tpu.memory_space<vmem>>, %arg14: memref<1x128xf32, #tpu.memory_space<vmem>>, %arg15: memref<8x128xf32, #tpu.memory_space<vmem>>, %arg16: memref<8x128xf32, #tpu.memory_space<vmem>>) attributes {dimension_semantics = [], scalar_prefetch = 0 : i64, scratch_operands = 0 : i64, tpu.core_type = #tpu.core_type<tc>} {
    %c0 = arith.constant 0 : index
    %c0_0 = arith.constant 0 : index
    %0 = vector.load %arg0[%c0, %c0_0] : memref<8x16xf32, #tpu.memory_space<vmem>>, vector<8x16xf32>
    %c0_1 = arith.constant 0 : index
    %c0_2 = arith.constant 0 : index
    %1 = vector.load %arg1[%c0_1, %c0_2] : memref<16x8xf32, #tpu.memory_space<vmem>>, vector<16x8xf32>
    %cst = arith.constant dense<0.000000e+00> : vector<8x8xf32>
    %2 = tpu.matmul %0, %1, %cst {dimension_numbers = #tpu.dot_dimension_numbers<[1], [0], [0], [1], [0, 0, 1, 1], [], []>} : vector<8x16xf32>, vector<16x8xf32>, vector<8x8xf32> -> vector<8x8xf32>
    %c0_3 = arith.constant 0 : index
    %c0_4 = arith.constant 0 : index
    %3 = vector.load %arg2[%c0_3, %c0_4] : memref<1x8xf32, #tpu.memory_space<vmem>>, vector<1x8xf32>
    %4 = vector.broadcast %3 : vector<1x8xf32> to vector<8x8xf32>
    %5 = arith.addf %2, %4 : vector<8x8xf32>
    %cst_5 = arith.constant 0.000000e+00 : f32
    %6 = vector.broadcast %cst_5 : f32 to vector<8x8xf32>
    %7 = arith.maximumf %5, %6 : vector<8x8xf32>
    %c0_6 = arith.constant 0 : index
    %c0_7 = arith.constant 0 : index
    %8 = vector.load %arg3[%c0_6, %c0_7] : memref<8x8xf32, #tpu.memory_space<vmem>>, vector<8x8xf32>
    %cst_8 = arith.constant dense<0.000000e+00> : vector<8x8xf32>
    %9 = tpu.matmul %7, %8, %cst_8 {dimension_numbers = #tpu.dot_dimension_numbers<[1], [0], [0], [1], [0, 0, 1, 1], [], []>} : vector<8x8xf32>, vector<8x8xf32>, vector<8x8xf32> -> vector<8x8xf32>
    %c0_9 = arith.constant 0 : index
    %c0_10 = arith.constant 0 : index
    %10 = vector.load %arg4[%c0_9, %c0_10] : memref<1x8xf32, #tpu.memory_space<vmem>>, vector<1x8xf32>
    %11 = vector.broadcast %10 : vector<1x8xf32> to vector<8x8xf32>
    %12 = arith.addf %9, %11 : vector<8x8xf32>
    %cst_11 = arith.constant 0.000000e+00 : f32
    %13 = vector.broadcast %cst_11 : f32 to vector<8x8xf32>
    %14 = arith.maximumf %12, %13 : vector<8x8xf32>
    %c0_12 = arith.constant 0 : index
    %c0_13 = arith.constant 0 : index
    %15 = vector.load %arg5[%c0_12, %c0_13] : memref<8x128xf32, #tpu.memory_space<vmem>>, vector<8x128xf32>
    %cst_14 = arith.constant dense<0.000000e+00> : vector<8x128xf32>
    %16 = tpu.matmul %14, %15, %cst_14 {dimension_numbers = #tpu.dot_dimension_numbers<[1], [0], [0], [1], [0, 0, 1, 1], [], []>} : vector<8x8xf32>, vector<8x128xf32>, vector<8x128xf32> -> vector<8x128xf32>
    %c0_15 = arith.constant 0 : index
    %c0_16 = arith.constant 0 : index
    %17 = vector.load %arg6[%c0_15, %c0_16] : memref<1x128xf32, #tpu.memory_space<vmem>>, vector<1x128xf32>
    %18 = vector.broadcast %17 : vector<1x128xf32> to vector<8x128xf32>
    %19 = arith.addf %16, %18 : vector<8x128xf32>
    %cst_17 = arith.constant dense<0xFF800000> : vector<8xf32>
    %20 = vector.multi_reduction <maximumf>, %19, %cst_17 [1] : vector<8x128xf32> to vector<8xf32>
    %21 = vector.shape_cast %20 : vector<8xf32> to vector<8x1xf32>
    %22 = vector.broadcast %21 : vector<8x1xf32> to vector<8x128xf32>
    %23 = arith.subf %19, %22 : vector<8x128xf32>
    %24 = math.exp %23 : vector<8x128xf32>
    %cst_18 = arith.constant dense<0.000000e+00> : vector<8xf32>
    %25 = vector.multi_reduction <add>, %24, %cst_18 [1] : vector<8x128xf32> to vector<8xf32>
    %26 = vector.shape_cast %25 : vector<8xf32> to vector<8x1xf32>
    %27 = math.log %26 : vector<8x1xf32>
    %28 = vector.broadcast %27 : vector<8x1xf32> to vector<8x128xf32>
    %29 = arith.subf %23, %28 : vector<8x128xf32>
    %c0_19 = arith.constant 0 : index
    %c0_20 = arith.constant 0 : index
    %30 = vector.load %arg15[%c0_19, %c0_20] : memref<8x128xf32, #tpu.memory_space<vmem>>, vector<8x128xf32>
    tpu.vector_store %arg15[%c0_19, %c0_20], %29 {strides = array<i32>} : memref<8x128xf32, #tpu.memory_space<vmem>>, vector<8x128xf32>,
    %c0_21 = arith.constant 0 : index
    %c0_22 = arith.constant 0 : index
    %31 = vector.load %arg7[%c0_21, %c0_22] : memref<8x3xf32, #tpu.memory_space<vmem>>, vector<8x3xf32>
    %32 = vector.extract_strided_slice %31 {offsets = [0, 0], sizes = [1, 3], strides = [1, 1]} : vector<8x3xf32> to vector<1x3xf32>
    %33 = vector.extract_strided_slice %31 {offsets = [4, 0], sizes = [1, 3], strides = [1, 1]} : vector<8x3xf32> to vector<1x3xf32>
    %34 = vector.extract_strided_slice %31 {offsets = [1, 0], sizes = [1, 3], strides = [1, 1]} : vector<8x3xf32> to vector<1x3xf32>
    %35 = vector.extract_strided_slice %31 {offsets = [5, 0], sizes = [1, 3], strides = [1, 1]} : vector<8x3xf32> to vector<1x3xf32>
    %36 = vector.extract_strided_slice %31 {offsets = [2, 0], sizes = [1, 3], strides = [1, 1]} : vector<8x3xf32> to vector<1x3xf32>
    %37 = vector.extract_strided_slice %31 {offsets = [6, 0], sizes = [1, 3], strides = [1, 1]} : vector<8x3xf32> to vector<1x3xf32>
    %38 = vector.extract_strided_slice %31 {offsets = [3, 0], sizes = [1, 3], strides = [1, 1]} : vector<8x3xf32> to vector<1x3xf32>
    %39 = vector.extract_strided_slice %31 {offsets = [7, 0], sizes = [1, 3], strides = [1, 1]} : vector<8x3xf32> to vector<1x3xf32>
    %40 = tpu.concatenate %32, %33, %34, %35, %36, %37, %38, %39 in 0 : vector<1x3xf32>, vector<1x3xf32>, vector<1x3xf32>, vector<1x3xf32>, vector<1x3xf32>, vector<1x3xf32>, vector<1x3xf32>, vector<1x3xf32> -> vector<8x3xf32>
    %c0_23 = arith.constant 0 : index
    %c0_24 = arith.constant 0 : index
    %41 = vector.load %arg8[%c0_23, %c0_24] : memref<3x32xf32, #tpu.memory_space<vmem>>, vector<3x32xf32>
    %cst_25 = arith.constant dense<0.000000e+00> : vector<8x32xf32>
    %42 = tpu.matmul %40, %41, %cst_25 {dimension_numbers = #tpu.dot_dimension_numbers<[1], [0], [0], [1], [0, 0, 1, 1], [], []>} : vector<8x3xf32>, vector<3x32xf32>, vector<8x32xf32> -> vector<8x32xf32>
    %c0_26 = arith.constant 0 : index
    %c0_27 = arith.constant 0 : index
    %43 = vector.load %arg10[%c0_26, %c0_27] : memref<1x32xf32, #tpu.memory_space<vmem>>, vector<1x32xf32>
    %44 = vector.broadcast %43 : vector<1x32xf32> to vector<8x32xf32>
    %45 = arith.addf %42, %44 : vector<8x32xf32>
    %c0_28 = arith.constant 0 : index
    %c0_29 = arith.constant 0 : index
    %46 = vector.load %arg9[%c0_28, %c0_29] : memref<8x32xf32, #tpu.memory_space<vmem>>, vector<8x32xf32>
    %cst_30 = arith.constant 0.000000e+00 : f32
    %47 = vector.broadcast %cst_30 : f32 to vector<2x8xf32>
    %cst_31 = arith.constant 0.000000e+00 : f32
    %48 = vector.broadcast %cst_31 : f32 to vector<2x8xf32>
    %49 = vector.extract_strided_slice %45 {offsets = [0, 0], sizes = [2, 32], strides = [1, 1]} : vector<8x32xf32> to vector<2x32xf32>
    %cst_32 = arith.constant dense<0.000000e+00> : vector<2x32xf32>
    %50 = tpu.matmul %47, %46, %cst_32 {dimension_numbers = #tpu.dot_dimension_numbers<[1], [0], [0], [1], [0, 0, 1, 1], [], []>} : vector<2x8xf32>, vector<8x32xf32>, vector<2x32xf32> -> vector<2x32xf32>
    %51 = arith.addf %49, %50 : vector<2x32xf32>
    %52 = vector.extract_strided_slice %51 {offsets = [0, 0], sizes = [2, 8], strides = [1, 1]} : vector<2x32xf32> to vector<2x8xf32>
    %53 = arith.negf %52 : vector<2x8xf32>
    %54 = math.exp %53 : vector<2x8xf32>
    %cst_33 = arith.constant 1.000000e+00 : f32
    %55 = vector.broadcast %cst_33 : f32 to vector<2x8xf32>
    %56 = arith.addf %55, %54 : vector<2x8xf32>
    %57 = arith.divf %55, %56 : vector<2x8xf32>
    %58 = vector.extract_strided_slice %51 {offsets = [0, 8], sizes = [2, 8], strides = [1, 1]} : vector<2x32xf32> to vector<2x8xf32>
    %59 = arith.negf %58 : vector<2x8xf32>
    %60 = math.exp %59 : vector<2x8xf32>
    %cst_34 = arith.constant 1.000000e+00 : f32
    %61 = vector.broadcast %cst_34 : f32 to vector<2x8xf32>
    %62 = arith.addf %61, %60 : vector<2x8xf32>
    %63 = arith.divf %61, %62 : vector<2x8xf32>
    %64 = vector.extract_strided_slice %51 {offsets = [0, 16], sizes = [2, 8], strides = [1, 1]} : vector<2x32xf32> to vector<2x8xf32>
    %65 = math.tanh %64 : vector<2x8xf32>
    %66 = vector.extract_strided_slice %51 {offsets = [0, 24], sizes = [2, 8], strides = [1, 1]} : vector<2x32xf32> to vector<2x8xf32>
    %67 = arith.negf %66 : vector<2x8xf32>
    %68 = math.exp %67 : vector<2x8xf32>
    %cst_35 = arith.constant 1.000000e+00 : f32
    %69 = vector.broadcast %cst_35 : f32 to vector<2x8xf32>
    %70 = arith.addf %69, %68 : vector<2x8xf32>
    %71 = arith.divf %69, %70 : vector<2x8xf32>
    %72 = arith.mulf %63, %48 : vector<2x8xf32>
    %73 = arith.mulf %57, %65 : vector<2x8xf32>
    %74 = arith.addf %72, %73 : vector<2x8xf32>
    %75 = math.tanh %74 : vector<2x8xf32>
    %76 = arith.mulf %71, %75 : vector<2x8xf32>
    %77 = vector.extract_strided_slice %45 {offsets = [2, 0], sizes = [2, 32], strides = [1, 1]} : vector<8x32xf32> to vector<2x32xf32>
    %cst_36 = arith.constant dense<0.000000e+00> : vector<2x32xf32>
    %78 = tpu.matmul %76, %46, %cst_36 {dimension_numbers = #tpu.dot_dimension_numbers<[1], [0], [0], [1], [0, 0, 1, 1], [], []>} : vector<2x8xf32>, vector<8x32xf32>, vector<2x32xf32> -> vector<2x32xf32>
    %79 = arith.addf %77, %78 : vector<2x32xf32>
    %80 = vector.extract_strided_slice %79 {offsets = [0, 0], sizes = [2, 8], strides = [1, 1]} : vector<2x32xf32> to vector<2x8xf32>
    %81 = arith.negf %80 : vector<2x8xf32>
    %82 = math.exp %81 : vector<2x8xf32>
    %cst_37 = arith.constant 1.000000e+00 : f32
    %83 = vector.broadcast %cst_37 : f32 to vector<2x8xf32>
    %84 = arith.addf %83, %82 : vector<2x8xf32>
    %85 = arith.divf %83, %84 : vector<2x8xf32>
    %86 = vector.extract_strided_slice %79 {offsets = [0, 8], sizes = [2, 8], strides = [1, 1]} : vector<2x32xf32> to vector<2x8xf32>
    %87 = arith.negf %86 : vector<2x8xf32>
    %88 = math.exp %87 : vector<2x8xf32>
    %cst_38 = arith.constant 1.000000e+00 : f32
    %89 = vector.broadcast %cst_38 : f32 to vector<2x8xf32>
    %90 = arith.addf %89, %88 : vector<2x8xf32>
    %91 = arith.divf %89, %90 : vector<2x8xf32>
    %92 = vector.extract_strided_slice %79 {offsets = [0, 16], sizes = [2, 8], strides = [1, 1]} : vector<2x32xf32> to vector<2x8xf32>
    %93 = math.tanh %92 : vector<2x8xf32>
    %94 = vector.extract_strided_slice %79 {offsets = [0, 24], sizes = [2, 8], strides = [1, 1]} : vector<2x32xf32> to vector<2x8xf32>
    %95 = arith.negf %94 : vector<2x8xf32>
    %96 = math.exp %95 : vector<2x8xf32>
    %cst_39 = arith.constant 1.000000e+00 : f32
    %97 = vector.broadcast %cst_39 : f32 to vector<2x8xf32>
    %98 = arith.addf %97, %96 : vector<2x8xf32>
    %99 = arith.divf %97, %98 : vector<2x8xf32>
    %100 = arith.mulf %91, %74 : vector<2x8xf32>
    %101 = arith.mulf %85, %93 : vector<2x8xf32>
    %102 = arith.addf %100, %101 : vector<2x8xf32>
    %103 = math.tanh %102 : vector<2x8xf32>
    %104 = arith.mulf %99, %103 : vector<2x8xf32>
    %105 = vector.extract_strided_slice %45 {offsets = [4, 0], sizes = [2, 32], strides = [1, 1]} : vector<8x32xf32> to vector<2x32xf32>
    %cst_40 = arith.constant dense<0.000000e+00> : vector<2x32xf32>
    %106 = tpu.matmul %104, %46, %cst_40 {dimension_numbers = #tpu.dot_dimension_numbers<[1], [0], [0], [1], [0, 0, 1, 1], [], []>} : vector<2x8xf32>, vector<8x32xf32>, vector<2x32xf32> -> vector<2x32xf32>
    %107 = arith.addf %105, %106 : vector<2x32xf32>
    %108 = vector.extract_strided_slice %107 {offsets = [0, 0], sizes = [2, 8], strides = [1, 1]} : vector<2x32xf32> to vector<2x8xf32>
    %109 = arith.negf %108 : vector<2x8xf32>
    %110 = math.exp %109 : vector<2x8xf32>
    %cst_41 = arith.constant 1.000000e+00 : f32
    %111 = vector.broadcast %cst_41 : f32 to vector<2x8xf32>
    %112 = arith.addf %111, %110 : vector<2x8xf32>
    %113 = arith.divf %111, %112 : vector<2x8xf32>
    %114 = vector.extract_strided_slice %107 {offsets = [0, 8], sizes = [2, 8], strides = [1, 1]} : vector<2x32xf32> to vector<2x8xf32>
    %115 = arith.negf %114 : vector<2x8xf32>
    %116 = math.exp %115 : vector<2x8xf32>
    %cst_42 = arith.constant 1.000000e+00 : f32
    %117 = vector.broadcast %cst_42 : f32 to vector<2x8xf32>
    %118 = arith.addf %117, %116 : vector<2x8xf32>
    %119 = arith.divf %117, %118 : vector<2x8xf32>
    %120 = vector.extract_strided_slice %107 {offsets = [0, 16], sizes = [2, 8], strides = [1, 1]} : vector<2x32xf32> to vector<2x8xf32>
    %121 = math.tanh %120 : vector<2x8xf32>
    %122 = vector.extract_strided_slice %107 {offsets = [0, 24], sizes = [2, 8], strides = [1, 1]} : vector<2x32xf32> to vector<2x8xf32>
    %123 = arith.negf %122 : vector<2x8xf32>
    %124 = math.exp %123 : vector<2x8xf32>
    %cst_43 = arith.constant 1.000000e+00 : f32
    %125 = vector.broadcast %cst_43 : f32 to vector<2x8xf32>
    %126 = arith.addf %125, %124 : vector<2x8xf32>
    %127 = arith.divf %125, %126 : vector<2x8xf32>
    %128 = arith.mulf %119, %102 : vector<2x8xf32>
    %129 = arith.mulf %113, %121 : vector<2x8xf32>
    %130 = arith.addf %128, %129 : vector<2x8xf32>
    %131 = math.tanh %130 : vector<2x8xf32>
    %132 = arith.mulf %127, %131 : vector<2x8xf32>
    %133 = vector.extract_strided_slice %45 {offsets = [6, 0], sizes = [2, 32], strides = [1, 1]} : vector<8x32xf32> to vector<2x32xf32>
    %cst_44 = arith.constant dense<0.000000e+00> : vector<2x32xf32>
    %134 = tpu.matmul %132, %46, %cst_44 {dimension_numbers = #tpu.dot_dimension_numbers<[1], [0], [0], [1], [0, 0, 1, 1], [], []>} : vector<2x8xf32>, vector<8x32xf32>, vector<2x32xf32> -> vector<2x32xf32>
    %135 = arith.addf %133, %134 : vector<2x32xf32>
    %136 = vector.extract_strided_slice %135 {offsets = [0, 0], sizes = [2, 8], strides = [1, 1]} : vector<2x32xf32> to vector<2x8xf32>
    %137 = arith.negf %136 : vector<2x8xf32>
    %138 = math.exp %137 : vector<2x8xf32>
    %cst_45 = arith.constant 1.000000e+00 : f32
    %139 = vector.broadcast %cst_45 : f32 to vector<2x8xf32>
    %140 = arith.addf %139, %138 : vector<2x8xf32>
    %141 = arith.divf %139, %140 : vector<2x8xf32>
    %142 = vector.extract_strided_slice %135 {offsets = [0, 8], sizes = [2, 8], strides = [1, 1]} : vector<2x32xf32> to vector<2x8xf32>
    %143 = arith.negf %142 : vector<2x8xf32>
    %144 = math.exp %143 : vector<2x8xf32>
    %cst_46 = arith.constant 1.000000e+00 : f32
    %145 = vector.broadcast %cst_46 : f32 to vector<2x8xf32>
    %146 = arith.addf %145, %144 : vector<2x8xf32>
    %147 = arith.divf %145, %146 : vector<2x8xf32>
    %148 = vector.extract_strided_slice %135 {offsets = [0, 16], sizes = [2, 8], strides = [1, 1]} : vector<2x32xf32> to vector<2x8xf32>
    %149 = math.tanh %148 : vector<2x8xf32>
    %150 = vector.extract_strided_slice %135 {offsets = [0, 24], sizes = [2, 8], strides = [1, 1]} : vector<2x32xf32> to vector<2x8xf32>
    %151 = arith.negf %150 : vector<2x8xf32>
    %152 = math.exp %151 : vector<2x8xf32>
    %cst_47 = arith.constant 1.000000e+00 : f32
    %153 = vector.broadcast %cst_47 : f32 to vector<2x8xf32>
    %154 = arith.addf %153, %152 : vector<2x8xf32>
    %155 = arith.divf %153, %154 : vector<2x8xf32>
    %156 = arith.mulf %147, %130 : vector<2x8xf32>
    %157 = arith.mulf %141, %149 : vector<2x8xf32>
    %158 = arith.addf %156, %157 : vector<2x8xf32>
    %159 = math.tanh %158 : vector<2x8xf32>
    %160 = arith.mulf %155, %159 : vector<2x8xf32>
    %161 = vector.extract_strided_slice %76 {offsets = [0, 0], sizes = [1, 8], strides = [1, 1]} : vector<2x8xf32> to vector<1x8xf32>
    %162 = vector.extract_strided_slice %104 {offsets = [0, 0], sizes = [1, 8], strides = [1, 1]} : vector<2x8xf32> to vector<1x8xf32>
    %163 = vector.extract_strided_slice %132 {offsets = [0, 0], sizes = [1, 8], strides = [1, 1]} : vector<2x8xf32> to vector<1x8xf32>
    %164 = vector.extract_strided_slice %160 {offsets = [0, 0], sizes = [1, 8], strides = [1, 1]} : vector<2x8xf32> to vector<1x8xf32>
    %165 = vector.extract_strided_slice %76 {offsets = [1, 0], sizes = [1, 8], strides = [1, 1]} : vector<2x8xf32> to vector<1x8xf32>
    %166 = vector.extract_strided_slice %104 {offsets = [1, 0], sizes = [1, 8], strides = [1, 1]} : vector<2x8xf32> to vector<1x8xf32>
    %167 = vector.extract_strided_slice %132 {offsets = [1, 0], sizes = [1, 8], strides = [1, 1]} : vector<2x8xf32> to vector<1x8xf32>
    %168 = vector.extract_strided_slice %160 {offsets = [1, 0], sizes = [1, 8], strides = [1, 1]} : vector<2x8xf32> to vector<1x8xf32>
    %169 = tpu.concatenate %161, %162, %163, %164, %165, %166, %167, %168 in 0 : vector<1x8xf32>, vector<1x8xf32>, vector<1x8xf32>, vector<1x8xf32>, vector<1x8xf32>, vector<1x8xf32>, vector<1x8xf32>, vector<1x8xf32> -> vector<8x8xf32>
    %c0_48 = arith.constant 0 : index
    %c0_49 = arith.constant 0 : index
    %170 = vector.load %arg11[%c0_48, %c0_49] : memref<8x8xf32, #tpu.memory_space<vmem>>, vector<8x8xf32>
    %cst_50 = arith.constant dense<0.000000e+00> : vector<8x8xf32>
    %171 = tpu.matmul %169, %170, %cst_50 {dimension_numbers = #tpu.dot_dimension_numbers<[1], [0], [0], [1], [0, 0, 1, 1], [], []>} : vector<8x8xf32>, vector<8x8xf32>, vector<8x8xf32> -> vector<8x8xf32>
    %c0_51 = arith.constant 0 : index
    %c0_52 = arith.constant 0 : index
    %172 = vector.load %arg12[%c0_51, %c0_52] : memref<1x8xf32, #tpu.memory_space<vmem>>, vector<1x8xf32>
    %173 = vector.broadcast %172 : vector<1x8xf32> to vector<8x8xf32>
    %174 = arith.addf %171, %173 : vector<8x8xf32>
    %cst_53 = arith.constant 0.000000e+00 : f32
    %175 = vector.broadcast %cst_53 : f32 to vector<8x8xf32>
    %176 = arith.maximumf %174, %175 : vector<8x8xf32>
    %c0_54 = arith.constant 0 : index
    %c0_55 = arith.constant 0 : index
    %177 = vector.load %arg13[%c0_54, %c0_55] : memref<8x128xf32, #tpu.memory_space<vmem>>, vector<8x128xf32>
    %cst_56 = arith.constant dense<0.000000e+00> : vector<8x128xf32>
    %178 = tpu.matmul %176, %177, %cst_56 {dimension_numbers = #tpu.dot_dimension_numbers<[1], [0], [0], [1], [0, 0, 1, 1], [], []>} : vector<8x8xf32>, vector<8x128xf32>, vector<8x128xf32> -> vector<8x128xf32>
    %c0_57 = arith.constant 0 : index
    %c0_58 = arith.constant 0 : index
    %179 = vector.load %arg14[%c0_57, %c0_58] : memref<1x128xf32, #tpu.memory_space<vmem>>, vector<1x128xf32>
    %180 = vector.broadcast %179 : vector<1x128xf32> to vector<8x128xf32>
    %181 = arith.addf %178, %180 : vector<8x128xf32>
    %c0_59 = arith.constant 0 : index
    %c0_60 = arith.constant 0 : index
    %182 = vector.load %arg16[%c0_59, %c0_60] : memref<8x128xf32, #tpu.memory_space<vmem>>, vector<8x128xf32>
    tpu.vector_store %arg16[%c0_59, %c0_60], %181 {strides = array<i32>} : memref<8x128xf32, #tpu.memory_space<vmem>>, vector<8x128xf32>,
    return
  }
}

</mosaic_0001>

<bundles_post_ra>
// kernel: nn_forward.1
= control target key start
LH: loop header
LB: loop body
LE: loop exit
PB: predicated region body
PF: predicated region fallthrough
CT: control target
= control target key end

     0   :  { %s1621_s0 = inlined_call_operand.vmem [shape: f32[8,16], index: 0, kind: input, shape index: {}]   ;;  %s1622_s1 = inlined_call_operand.vmem [shape: f32[16,8], index: 1, kind: input, shape index: {}]   ;;  %s1623_s2 = inlined_call_operand.hbm [shape: f32[1,8], index: 2, kind: input, shape index: {}]   ;;  %s1624_s3 = inlined_call_operand.vmem [shape: f32[8,8], index: 3, kind: input, shape index: {}]   ;;  %s1625_s4 = inlined_call_operand.hbm [shape: f32[1,8], index: 4, kind: input, shape index: {}]   ;;  %s1626_s5 = inlined_call_operand.vmem [shape: f32[8,128], index: 5, kind: input, shape index: {}]   ;;  %s1627_s6 = inlined_call_operand.hbm [shape: f32[1,128], index: 6, kind: input, shape index: {}]   ;;  %s1628_s7 = inlined_call_operand.vmem [shape: f32[8,3], index: 7, kind: input, shape index: {}]   ;;  %s1629_s8 = inlined_call_operand.hbm [shape: f32[3,32], index: 8, kind: input, shape index: {}]   ;;  %s1630_s9 = inlined_call_operand.vmem [shape: f32[8,32], index: 9, kind: input, shape index: {}]   ;;  %s1631_s10 = inlined_call_operand.vmem [shape: f32[1,32], index: 10, kind: input, shape index: {}]   ;;  %s1632_s11 = inlined_call_operand.vmem [shape: f32[8,8], index: 11, kind: input, shape index: {}]   ;;  %s1633_s12 = inlined_call_operand.vmem [shape: f32[1,8], index: 12, kind: input, shape index: {}]   ;;  %s1634_s13 = inlined_call_operand.vmem [shape: f32[8,128], index: 13, kind: input, shape index: {}]   ;;  %s1635_s14 = inlined_call_operand.vmem [shape: f32[1,128], index: 14, kind: input, shape index: {}]   ;;  %s1636_s15 = inlined_call_operand.hbm [shape: f32[8,128], index: 15, kind: output, shape index: {0}]   ;;  %s1637_s16 = inlined_call_operand.hbm [shape: f32[8,128], index: 16, kind: output, shape index: {1}]  }
   0x1   :  { %1638 = sst [smem:[#allocation18_spill]] %s1621_s0 }
   0x2   :  { %22 = vsyncpa [#allocation3], 0 }
   0x3   :  { %23 = vsyncpa [#allocation6], 0 }
   0x4   :  { %24 = vsyncpa [#allocation9], 0 }
   0x5   :  { %25 = vsyncpa [#allocation4], 0 }
   0x6   :  { %26 = vsyncpa [#allocation12], 0  ;;  %s1381_s21 = smov [#allocation5]   ;;  %s1382_s23 = smov [#allocation2]  }
   0x7   :  { %s49_s22 = sshll.u32 %s1381_s21, 4  ;;  %s37_s24 = sshll.u32 %s1382_s23, 4  ;;  %s50_s22 = int_to_ptr.vmem [resolvable:$true] %s49_s22  ;;  %s38_s24 = int_to_ptr.vmem [resolvable:$true] %s37_s24 }
   0x8   :  { %s1259_s25 = scalar_lea.vmem %s50_s22, 16  ;;  %s1263_s26 = scalar_lea.vmem %s50_s22, 32 }
   0x9   :  { %p1260_p0 = scmp.ne.s32.totalorder %s50_s22, %s1259_s25  ;;  %p1264_p1 = scmp.lt.s32.totalorder %s50_s22, %s50_s22 }
   0xa   :  { %p1265_p2 = scmp.lt.s32.totalorder %s1263_s26, %s1259_s25 }
   0xc   :  { %p1266_p3 = por %p1265_p2, %p1264_p1 }
   0xe   :  { %p1267_p4 = pnand %p1266_p3, %p1260_p0 }
  0x10   :  { %1270 = shalt.err (!%p1267_p4)
}
  0x11   :  { %52 = dma.hbm_to_vmem [thread:$0]  %s1625_s4, 16, %s50_s22, [#allocation6]  }
  0x12   :  { %s1279_s29 = scalar_lea.vmem %s38_s24, 16  ;;  %s1283_s30 = scalar_lea.vmem %s38_s24, 32 }
  0x13   :  { %p1280_p5 = scmp.ne.s32.totalorder %s38_s24, %s1279_s29  ;;  %p1284_p6 = scmp.lt.s32.totalorder %s38_s24, %s38_s24 }
  0x14   :  { %p1285_p7 = scmp.lt.s32.totalorder %s1283_s30, %s1279_s29 }
  0x16   :  { %p1286_p8 = por %p1285_p7, %p1284_p6 }
  0x18   :  { %p1287_p9 = pnand %p1286_p8, %p1280_p5 }
  0x1a   :  { %1290 = shalt.err (!%p1287_p9)
}
  0x1b   :  { %40 = dma.hbm_to_vmem [thread:$0]  %s1623_s2, 16, %s38_s24, [#allocation3]  }
  0x1c   :  { %s1383_s18 = smov [#allocation7]   ;;  %s1384_s20 = smov [#allocation8]  }
  0x1d   :  { %s61_s19 = sshll.u32 %s1383_s18, 4  ;;  %s73_s21 = sshll.u32 %s1384_s20, 4  ;;  %s62_s19 = int_to_ptr.vmem [resolvable:$true] %s61_s19  ;;  %s74_s21 = int_to_ptr.vmem [resolvable:$true] %s73_s21 }
  0x1e   :  { %s1299_s23 = scalar_lea.vmem %s62_s19, 16  ;;  %s1303_s4 = scalar_lea.vmem %s62_s19, 32 }
  0x1f   :  { %p1300_p10 = scmp.ne.s32.totalorder %s62_s19, %s1299_s23  ;;  %p1304_p11 = scmp.lt.s32.totalorder %s62_s19, %s62_s19 }
  0x20   :  { %p1305_p12 = scmp.lt.s32.totalorder %s1303_s4, %s1299_s23 }
  0x22   :  { %p1306_p13 = por %p1305_p12, %p1304_p11 }
  0x24   :  { %p1307_p0 = pnand %p1306_p13, %p1300_p10 }
  0x26   :  { %1310 = shalt.err (!%p1307_p0)
}
  0x27   :  { %64 = dma.hbm_to_vmem [thread:$0]  %s1627_s6, 16, %s62_s19, [#allocation6]  }
  0x28   :  { %s1319_s26 = scalar_lea.vmem %s74_s21, 64  ;;  %p1324_p2 = scmp.lt.s32.totalorder %s74_s21, %s74_s21 }
  0x29   :  { %p1320_p1 = scmp.ne.s32.totalorder %s74_s21, %s1319_s26  ;;  %p1325_p3 = scmp.lt.s32.totalorder %s1319_s26, %s1319_s26 }
  0x2b   :  { %p1326_p4 = por %p1325_p3, %p1324_p2 }
  0x2d   :  { %p1327_p5 = pnand %p1326_p4, %p1320_p1 }
  0x2f   :  { %1330 = shalt.err (!%p1327_p5)
}
  0x30   :  { %76 = dma.hbm_to_vmem [thread:$0]  %s1629_s8, 64, %s74_s21, [#allocation9]  }
  0x31   :  { %1371 = dma.done.wait [#allocation3], 16  }
  0x32   :  { %1372 = vsyncadd [#allocation3], 4294967280 }
  0x33   :  { %1373 = dma.done.wait [#allocation6], 32  }
  0x34   :  { %1374 = vsyncadd [#allocation6], 4294967264 }
  0x35   :  { %1375 = dma.done.wait [#allocation9], 64  }
  0x36   :  { %1376 = vsyncadd [#allocation9], 4294967232  ;;  %v1385_v0 = vmov 0.0   ;;  %vm1386_vm0 = vmmov 0   ;;  %v103_v1 = vld [vmem:[%s1622_s1 + $0x8] sm:$0xff]  ;;  %v102_v2 = vld [vmem:[%s1622_s1] sm:$0xff] }
  0x37   :  { %1151 = vmatprep.subr.mxu0 %v1385_v0  ;;  %1155 = vmatprep.mubr.msk.f32.mxu0 %vm1386_vm0, %v1385_v0  ;;  %s1639_s0 = sld [smem:[#allocation18_spill]]  ;;  %vm111_vm1 = vcmask 130048   ;;  %v186_v4 = vld [vmem:[%s1624_s3] sm:$0xff]  ;;  %vm194_vm2 = vcmask 64512   ;;  %vm375_vm3 = vcmask 1040384   ;;  %vm377_vm4 = vcmask 1041408  }
  0x38   :  { %1158 = vmatprep.subr.mxu1 %v1385_v0  ;;  %1160 = vmatprep.mubr.msk.f32.mxu1 %vm1386_vm0, %v1385_v0  ;;  %v1110_v5 = vld [vmem:[#allocation2] ss:$0 sm:$0xff]  ;;  %vm379_vm5 = vcmask 1042432   ;;  %vm381_vm6 = vcmask 1043456   ;;  %vm383_vm7 = vcmask 1044480   ;;  %vm385_vm8 = vcmask 1045504  }
  0x39   :  { %1152 = vmatpush3.msra.mxu0 %v103_v1  ;;  %1159 = vmatpush3.msra.mxu1 %v186_v4  ;;  %v361_v10 = vld [vmem:[%s1628_s7] sm:$0xff]  ;;  %vm387_vm9 = vcmask 1046528   ;;  %vm397_vm10 = vcmask 23552   ;;  %s1387_s23 = smov 112   ;;  %s1389_s4 = smov 16  }
  0x3a   :  { %1153 = vmatprep.subr.mxu0 %v1385_v0  ;;  %1163 = vmatprep.subr.mxu1 %v1385_v0  ;;  %v363_v11 = vrot.slane %v361_v10, 3  ;;  %v365_v12 = vrot.slane %v361_v10, 7  ;;  %v367_v13 = vrot.slane %v361_v10, 2  ;;  %v369_v15 = vrot.slane %v361_v10, 6  ;;  %v269_v22 = vld [vmem:[%s1626_s5] sm:$0xff]  ;;  %s1390_s22 = smov 104  }
  0x3b   :  { %1154 = vmatpush3.msra.mxu0 %v102_v2  ;;  %v371_v18 = vrot.slane %v361_v10, 1  ;;  %v373_v20 = vrot.slane %v361_v10, 5  ;;  %v389_v23 = vld [vmem:[#allocation8] sm:$0x7]  ;;  %v1112_v27 = vld [vmem:[#allocation5] ss:$0 sm:$0xff] }
  0x3c   :  { %1168 = vmatprep.subr.mxu0 %v1385_v0  ;;  %v376_v14 = vsel %vm375_vm3, %v361_v10, %v363_v11  ;;  %v474_v26 = vld [vmem:[%s1630_s9] sm:$0xff]  ;;  %s1391_s8 = smov [#allocation10]  }
  0x3d   :  { %v101_v3 = vld [vmem:[%s1639_s0] sm:$0xff]  ;;  %v378_v16 = vsel %vm377_vm4, %v376_v14, %v365_v12  ;;  %s1085_s27 = sshll.u32 %s1391_s8, 4  ;;  %s1086_s27 = int_to_ptr.vmem [resolvable:$true] %s1085_s27 }
  0x3e   :  { %1156 = vmatmul.mubr.msk.f32.vlgmr.msra.gmra.mxu0 %vm111_vm1, %v101_v3  ;;  %v380_v17 = vsel %vm379_vm5, %v378_v16, %v367_v13  ;;  %v1116_v34 = vld [vmem:[%s1631_s10] ss:$0 sm:$0xff]  ;;  %s1388_s10 = smov 8   ;;  %p1336_p7 = scmp.lt.s32.totalorder %s1086_s27, %s1086_s27 }
  0x3f   :  { %1170 = vmatprep.mubr.msk.f32.mxu0 %vm1386_vm0, %v1385_v0  ;;  %v382_v19 = vsel %vm381_vm6, %v380_v17, %v369_v15  ;;  %1169 = vmatpush3.msk.msra.mxu0 %vm379_vm5, %v389_v23 }
  0x40   :  { %v384_v21 = vsel %vm383_vm7, %v382_v19, %v371_v18  ;;  %1178 = vmatprep.subr.mxu0 %v1385_v0 }
  0x41   :  { %v386_v24 = vsel %vm385_vm8, %v384_v21, %v373_v20 }
  0x42   :  { %v388_v25 = vsel %vm387_vm9, %v386_v24, %v361_v10 }
  0x43   :  { %1171 = vmatmul.mubr.msk.f32.vlgmr.msra.gmra.mxu0 %vm397_vm10, %v388_v25 }
  0x44   :  { %1180 = vmatprep.mubr.msk.f32.mxu0 %vm1386_vm0, %v1385_v0  ;;  %1179 = vmatpush3.msra.mxu0 %v474_v26 }
  0x45   :  { %1188 = vmatprep.subr.mxu0 %v1385_v0 }
  0xfe   :  { %v181_v6 = vpop.f32.mrf.mxu0 }
  0xff   :  { %v182_v7 = vadd.f32 %v1110_v5, %v181_v6 }
 0x100   :  { %v1157_v8 = vpop.f32.mrf.mxu0 }
 0x101   :  { %v185_v9 = vmax.f32 %v182_v7, 0.0 }
 0x103   :  { %1161 = vmatmul.mubr.msk.f32.vlgmr.msra.gmra.mxu1 %vm194_vm2, %v185_v9  ;;  %v470_v32 = vpop.f32.mrf.mxu0 }
 0x104   :  { %1165 = vmatprep.mubr.msk.f32.mxu1 %vm1386_vm0, %v1385_v0  ;;  %1164 = vmatpush3.msra.mxu1 %v269_v22  ;;  %v1551_v36 = vadd.f32 %v1116_v34, %v470_v32 }
 0x105   :  { %1173 = vmatprep.subr.mxu1 %v1385_v0  ;;  %v1172_v33 = vpop.f32.mrf.mxu0 }
 0x1c3   :  { %v264_v28 = vpop.f32.mrf.mxu1 }
 0x1c4   :  { %v265_v29 = vadd.f32 %v1112_v27, %v264_v28 }
 0x1c5   :  { %v1162_v30 = vpop.f32.mrf.mxu1 }
 0x1c6   :  { %v268_v31 = vmax.f32 %v265_v29, 0.0 }
 0x1c8   :  { %1166 = vmatmul.mubr.msk.f32.vlgmr.msra.gmra.mxu1 %vm194_vm2, %v268_v31 }
 0x1c9   :  { %1174 = vmatpush3.msra.mxu1 %v474_v26  ;;  %1175 = vmatprep.mubr.msk.f32.mxu1 %vm1386_vm0, %v1385_v0 }
 0x1ca   :  { %1183 = vmatprep.subr.mxu1 %v1385_v0 }
 0x1cc   :  { %1176 = vmatmul.mubr.f32.vlgmr.msra.gmra.mxu1 %v1385_v0 }
 0x1cd   :  { %1184 = vmatpush3.msra.mxu1 %v474_v26  ;;  %1185 = vmatprep.mubr.msk.f32.mxu1 %vm1386_vm0, %v1385_v0 }
 0x1ce   :  { %1193 = vmatprep.subr.mxu1 %v1385_v0 }
 0x288   :  { %v1549_v35 = vpop.f32.mrf.mxu1 }
 0x28a   :  { %v1167_v37 = vpop.f32.mrf.mxu1 }
 0x28c   :  { %v544_v38 = vpop.f32.mrf.mxu1 }
 0x28d   :  { %v548_v39 = vadd.f32 %v544_v38, %v1551_v36 }
 0x28e   :  { %v1177_v40 = vpop.f32.mrf.mxu1 }
 0x28f   :  { %1215 = vtanh.f32 %v548_v39  ;;  %v1119_v42 = vmul.f32 -1.442695, %v548_v39 }
 0x291   :  { %1217 = vpow2.f32 %v1119_v42 }
 0x29c   :  { %v1216_v41 = vpop.eup %1215 }
 0x29d   :  { %558 = vrot.lane.b32.xlu0 %v1216_v41, %s1387_s23 }
 0x29e   :  { %v1218_v43 = vpop.eup %1217 }
 0x29f   :  { %v552_v44 = vadd.f32 1.0, %v1218_v43 }
 0x2a1   :  { %1219 = vrcp.f32 %v552_v44 }
 0x2ae   :  { %v1220_v45 = vpop.eup %1219 }
 0x2af   :  { %v556_v48 = vmul.f32 0.0, %v1220_v45 }
 0x30f   :  { %v559_v46 = vpop.permute.xlu0 %558 }
 0x310   :  { %v561_v47 = vmul.f32 %v1220_v45, %v559_v46 }
 0x312   :  { %563 = vrot.lane.b32.xlu0 %v561_v47, %s1388_s10 }
 0x384   :  { %v564_v49 = vpop.permute.xlu0 %563 }
 0x385   :  { %v566_v50 = vadd.f32 %v564_v49, %v556_v48 }
 0x387   :  { %1221 = vtanh.f32 %v566_v50  ;;  %v660_v3 = vrot.slane %v566_v50, 6 }
 0x394   :  { %v1222_v51 = vpop.eup %1221 }
 0x395   :  { %569 = vrot.lane.b32.xlu1 %v1222_v51, %s1389_s4 }
 0x407   :  { %v570_v52 = vpop.permute.xlu1 %569 }
 0x408   :  { %v1557_v53 = vmul.f32 %v1220_v45, %v570_v52  ;;  %v1114_v52 = vld [vmem:[#allocation7] ss:$0 sm:$0xff] }
 0x40a   :  { %574 = vrot.lane.b32.xlu1 %v1557_v53, %s1390_s22 }
 0x47c   :  { %v575_v54 = vpop.permute.xlu1 %574 }
 0x47d   :  { %1181 = vmatmul.mubr.msk.f32.vlgmr.msra.gmra.mxu0 %vm194_vm2, %v575_v54  ;;  %v347_v54 = vadd.f32 %v1114_v52, %v1549_v35 }
 0x47e   :  { %1189 = vmatpush3.msra.mxu0 %v474_v26  ;;  %1190 = vmatprep.mubr.msk.f32.mxu0 %vm1386_vm0, %v1385_v0 }
 0x47f   :  { %1198 = vmatprep.subr.mxu0 %v1385_v0 }
 0x53d   :  { %v644_v55 = vpop.f32.mrf.mxu0 }
 0x53e   :  { %v649_v56 = vrot.slane %v644_v55, 6  ;;  %v913_v55 = vld [vmem:[%s1632_s11] sm:$0xff] }
 0x53f   :  { %v1182_v57 = vpop.f32.mrf.mxu0 }
 0x540   :  { %v651_v58 = vadd.f32 %v649_v56, %v1551_v36 }
 0x542   :  { %1223 = vtanh.f32 %v651_v58  ;;  %v1121_v60 = vmul.f32 -1.442695, %v651_v58 }
 0x544   :  { %1225 = vpow2.f32 %v1121_v60 }
 0x54f   :  { %v1224_v59 = vpop.eup %1223 }
 0x550   :  { %664 = vrot.lane.b32.xlu0 %v1224_v59, %s1387_s23  ;;  %v900_v59 = vrot.slane %v1557_v53, 5 }
 0x551   :  { %v1226_v61 = vpop.eup %1225 }
 0x552   :  { %v655_v62 = vadd.f32 1.0, %v1226_v61 }
 0x554   :  { %1227 = vrcp.f32 %v655_v62 }
 0x561   :  { %v1228_v63 = vpop.eup %1227 }
 0x562   :  { %v662_v4 = vmul.f32 %v1228_v63, %v660_v3 }
 0x5c2   :  { %v665_v1 = vpop.permute.xlu0 %664 }
 0x5c3   :  { %v667_v2 = vmul.f32 %v1228_v63, %v665_v1 }
 0x5c5   :  { %669 = vrot.lane.b32.xlu1 %v667_v2, %s1388_s10 }
 0x637   :  { %v670_v5 = vpop.permute.xlu1 %669 }
 0x638   :  { %v672_v6 = vadd.f32 %v670_v5, %v662_v4 }
 0x63a   :  { %1229 = vtanh.f32 %v672_v6  ;;  %v767_v23 = vrot.slane %v672_v6, 6 }
 0x647   :  { %v1230_v7 = vpop.eup %1229 }
 0x648   :  { %675 = vrot.lane.b32.xlu0 %v1230_v7, %s1389_s4  ;;  %v997_v7 = vld [vmem:[%s1634_s13] sm:$0xff]  ;;  %s1331_s13 = scalar_lea.vmem %s1086_s27, 128 }
 0x649   :  { %p1332_p6 = scmp.ne.s32.totalorder %s1086_s27, %s1331_s13  ;;  %p1337_p8 = scmp.lt.s32.totalorder %s1331_s13, %s1331_s13 }
 0x64b   :  { %p1338_p9 = por %p1337_p8, %p1336_p7 }
 0x64d   :  { %p1339_p10 = pnand %p1338_p9, %p1332_p6 }
 0x6ba   :  { %v676_v8 = vpop.permute.xlu0 %675 }
 0x6bb   :  { %v1569_v9 = vmul.f32 %v1228_v63, %v676_v8 }
 0x6bd   :  { %v680_v10 = vrot.slane %v1569_v9, 2  ;;  %v893_v28 = vrot.slane %v1569_v9, 1  ;;  %v902_v60 = vrot.slane %v1569_v9, 6 }
 0x6bf   :  { %681 = vrot.lane.b32.xlu1 %v680_v10, %s1390_s22  ;;  %v906_v33 = vsel %vm375_vm3, %v1557_v53, %v893_v28 }
 0x731   :  { %v682_v11 = vpop.permute.xlu1 %681 }
 0x732   :  { %1186 = vmatmul.mubr.msk.f32.vlgmr.msra.gmra.mxu1 %vm194_vm2, %v682_v11 }
 0x733   :  { %1195 = vmatprep.mubr.msk.f32.mxu1 %vm1386_vm0, %v1385_v0  ;;  %1194 = vmatpush3.msra.mxu1 %v913_v55 }
 0x7f2   :  { %v751_v12 = vpop.f32.mrf.mxu1 }
 0x7f3   :  { %v756_v13 = vrot.slane %v751_v12, 4  ;;  %v1126_v12 = vld [vmem:[%s1633_s12] ss:$0 sm:$0xff] }
 0x7f4   :  { %v1187_v14 = vpop.f32.mrf.mxu1 }
 0x7f5   :  { %v758_v15 = vadd.f32 %v756_v13, %v1551_v36 }
 0x7f7   :  { %1231 = vtanh.f32 %v758_v15  ;;  %v1123_v17 = vmul.f32 -1.442695, %v758_v15 }
 0x7f9   :  { %1233 = vpow2.f32 %v1123_v17 }
 0x804   :  { %v1232_v16 = vpop.eup %1231 }
 0x805   :  { %771 = vrot.lane.b32.xlu0 %v1232_v16, %s1387_s23 }
 0x806   :  { %v1234_v18 = vpop.eup %1233 }
 0x807   :  { %v762_v19 = vadd.f32 1.0, %v1234_v18 }
 0x809   :  { %1235 = vrcp.f32 %v762_v19 }
 0x816   :  { %v1236_v20 = vpop.eup %1235 }
 0x817   :  { %v769_v24 = vmul.f32 %v1236_v20, %v767_v23 }
 0x877   :  { %v772_v21 = vpop.permute.xlu0 %771 }
 0x878   :  { %v774_v22 = vmul.f32 %v1236_v20, %v772_v21 }
 0x87a   :  { %776 = vrot.lane.b32.xlu1 %v774_v22, %s1388_s10 }
 0x8ec   :  { %v777_v25 = vpop.permute.xlu1 %776 }
 0x8ed   :  { %v779_v26 = vadd.f32 %v777_v25, %v769_v24 }
 0x8ef   :  { %1237 = vtanh.f32 %v779_v26 }
 0x8fc   :  { %v1238_v27 = vpop.eup %1237 }
 0x8fd   :  { %782 = vrot.lane.b32.xlu0 %v1238_v27, %s1389_s4 }
 0x96f   :  { %v783_v29 = vpop.permute.xlu0 %782 }
 0x970   :  { %v785_v30 = vmul.f32 %v1236_v20, %v783_v29 }
 0x972   :  { %v895_v31 = vrot.slane %v785_v30, 2  ;;  %v787_v32 = vrot.slane %v785_v30, 4  ;;  %v904_v62 = vrot.slane %v785_v30, 7 }
 0x974   :  { %788 = vrot.lane.b32.xlu1 %v787_v32, %s1390_s22  ;;  %v907_v34 = vsel %vm377_vm4, %v906_v33, %v895_v31 }
 0x9e6   :  { %v789_v37 = vpop.permute.xlu1 %788 }
 0x9e7   :  { %1191 = vmatmul.mubr.msk.f32.vlgmr.msra.gmra.mxu0 %vm194_vm2, %v789_v37 }
 0x9e8   :  { %1200 = vmatprep.mubr.msk.f32.mxu0 %vm1386_vm0, %v1385_v0  ;;  %v874_v0 = vrot.slane %v779_v26, 6  ;;  %1199 = vmatpush3.msra.mxu0 %v997_v7 }
 0xaa7   :  { %v858_v38 = vpop.f32.mrf.mxu0 }
 0xaa8   :  { %v863_v39 = vrot.slane %v858_v38, 2 }
 0xaa9   :  { %v1192_v40 = vpop.f32.mrf.mxu0 }
 0xaaa   :  { %v865_v41 = vadd.f32 %v863_v39, %v1551_v36 }
 0xaac   :  { %1239 = vtanh.f32 %v865_v41  ;;  %v1125_v43 = vmul.f32 -1.442695, %v865_v41 }
 0xaae   :  { %1241 = vpow2.f32 %v1125_v43 }
 0xab9   :  { %v1240_v42 = vpop.eup %1239 }
 0xaba   :  { %878 = vrot.lane.b32.xlu0 %v1240_v42, %s1387_s23 }
 0xabb   :  { %v1242_v44 = vpop.eup %1241 }
 0xabc   :  { %v869_v45 = vadd.f32 1.0, %v1242_v44 }
 0xabe   :  { %1243 = vrcp.f32 %v869_v45 }
 0xacb   :  { %v1244_v46 = vpop.eup %1243 }
 0xacc   :  { %v876_v49 = vmul.f32 %v1244_v46, %v874_v0 }
 0xb2c   :  { %v879_v47 = vpop.permute.xlu0 %878 }
 0xb2d   :  { %v881_v48 = vmul.f32 %v1244_v46, %v879_v47 }
 0xb2f   :  { %883 = vrot.lane.b32.xlu1 %v881_v48, %s1388_s10 }
 0xba1   :  { %v884_v50 = vpop.permute.xlu1 %883 }
 0xba2   :  { %v886_v51 = vadd.f32 %v884_v50, %v876_v49 }
 0xba4   :  { %1245 = vtanh.f32 %v886_v51 }
 0xbb1   :  { %v1246_v36 = vpop.eup %1245 }
 0xbb2   :  { %889 = vrot.lane.b32.xlu0 %v1246_v36, %s1389_s4 }
 0xbd1   :  { %350 = vmax.xlane.f32.xlu0 %v347_v54 }
 0xc24   :  { %v890_v56 = vpop.permute.xlu0 %889 }
 0xc25   :  { %v892_v57 = vmul.f32 %v1244_v46, %v890_v56 }
 0xc27   :  { %v898_v58 = vrot.slane %v892_v57, 3 }
 0xc29   :  { %v908_v61 = vsel %vm379_vm5, %v907_v34, %v898_v58 }
 0xc2a   :  { %v909_v63 = vsel %vm381_vm6, %v908_v61, %v900_v59 }
 0xc2b   :  { %v910_v35 = vsel %vm383_vm7, %v909_v63, %v902_v60 }
 0xc2c   :  { %v911_v1 = vsel %vm385_vm8, %v910_v35, %v904_v62 }
 0xc2d   :  { %v912_v2 = vsel %vm387_vm9, %v911_v1, %v892_v57 }
 0xc2e   :  { %922 = vrot.lane.b32.xlu1 %v912_v2, %s1390_s22 }
 0xc5a   :  { %v351_v3 = vpop.xlane.xlu0 %350 }
 0xc5b   :  { %v352_v4 = vsub.f32 %v347_v54, %v351_v3 }
 0xc5d   :  { %v353_v5 = vmul.f32 1.442695, %v352_v4 }
 0xc5f   :  { %1247 = vpow2.f32 %v353_v5 }
 0xc6c   :  { %v1248_v53 = vpop.eup %1247 }
 0xc6d   :  { %355 = vadd.xlane.f32.xlu1 %v1248_v53 }
 0xca0   :  { %v923_v6 = vpop.permute.xlu1 %922 }
 0xca1   :  { %1196 = vmatmul.mubr.msk.f32.vlgmr.msra.gmra.mxu1 %vm194_vm2, %v923_v6 }
 0xcf6   :  { %v356_v8 = vpop.xlane.xlu1 %355 }
 0xcf7   :  { %1249 = vlog2.f32 %v356_v8 }
 0xd04   :  { %v1250_v9 = vpop.eup %1249 }
 0xd05   :  { %v358_v10 = vmul.f32 0.6931472, %v1250_v9 }
 0xd07   :  { %v359_v11 = vsub.f32 %v352_v4, %v358_v10 }
 0xd09   :  { %360 = vst [vmem:[#allocation10] sm:$0xff] %v359_v11 }
 0xd61   :  { %v992_v13 = vpop.f32.mrf.mxu1 }
 0xd62   :  { %v993_v14 = vadd.f32 %v1126_v12, %v992_v13 }
 0xd63   :  { %v1197_v15 = vpop.f32.mrf.mxu1 }
 0xd64   :  { %v996_v16 = vmax.f32 %v993_v14, 0.0 }
 0xd66   :  { %1201 = vmatmul.mubr.msk.f32.vlgmr.msra.gmra.mxu0 %vm194_vm2, %v996_v16 }
 0xd67   :  { %1342 = shalt.err (!%p1339_p10)
}
 0xd68   :  { %1088 = dma.vmem_to_hbm [thread:$0]  %s1086_s27, 128, %s1636_s15, [#allocation4]   ;;  %v1128_v17 = vld [vmem:[%s1635_s14] ss:$0 sm:$0xff] }
 0xd69   :  { %s1392_s0 = smov [#allocation11]  }
 0xd6a   :  { %s1095_s17 = sshll.u32 %s1392_s0, 4  ;;  %s1096_s17 = int_to_ptr.vmem [resolvable:$true] %s1095_s17 }
 0xd6b   :  { %s1351_s18 = scalar_lea.vmem %s1096_s17, 128  ;;  %p1356_p12 = scmp.lt.s32.totalorder %s1096_s17, %s1096_s17 }
 0xd6c   :  { %p1352_p11 = scmp.ne.s32.totalorder %s1096_s17, %s1351_s18  ;;  %p1357_p13 = scmp.lt.s32.totalorder %s1351_s18, %s1351_s18 }
 0xd6e   :  { %p1358_p0 = por %p1357_p13, %p1356_p12 }
 0xd70   :  { %p1359_p1 = pnand %p1358_p0, %p1352_p11 }
 0xe26   :  { %v1074_v18 = vpop.f32.mrf.mxu0 }
 0xe27   :  { %v1075_v19 = vadd.f32 %v1128_v17, %v1074_v18 }
 0xe28   :  { %v1202_v20 = vpop.f32.mrf.mxu0 }
 0xe29   :  { %1078 = vst [vmem:[#allocation11] sm:$0xff] %v1075_v19 }
 0xe2a   :  { %1362 = shalt.err (!%p1359_p1)
}
 0xe2b   :  { %1098 = dma.vmem_to_hbm [thread:$0]  %s1096_s17, 128, %s1637_s16, [#allocation12]  }
 0xe2c   :  { %1377 = dma.done.wait [#allocation4], 128  }
 0xe2d   :  { %1378 = vsyncadd [#allocation4], 4294967168 }
 0xe2e   :  { %1379 = dma.done.wait [#allocation12], 128  }
 0xe2f   :  { %1380 = vsyncadd [#allocation12], 4294967168 }
 0xe30   :  { %1105 = vsyncpa [#allocation3], 1 }
 0xe31   :  { %1106 = vsyncpa [#allocation6], 1 }
 0xe32   :  { %1107 = vsyncpa [#allocation9], 1 }
 0xe33   :  { %1108 = vsyncpa [#allocation4], 1 }
 0xe34   :  { %1109 = vsyncpa [#allocation12], 1 }

</bundles_post_ra>
